<compile_context>
chip_gen: v7x
topology: tpu7x:2x2x1
jax: 0.10.0
libtpu: 0.0.40
codegen_flags: <defaults>
</compile_context>

<pallas_src>
import functools

import jax
import jax.numpy as jnp
import numpy as np
from jax import lax
from jax.experimental import pallas as pl
from jax.experimental.pallas import tpu as pltpu

BN_EPS = 1e-5


# --------------------------------------------------------------------- utils --

def _largest_divisor_tile(n, cap):
    t = min(n, cap)
    while n % t:
        t -= 1
    return t


# ------------------------------------------------------------------- kernels --

def _matmul_bias_act_kernel(x_ref, w_ref, b_ref, o_ref, *, act):
    # x:(tm,K) w:(K,D) b:(1,D) -> o:(tm,D)
    y = jnp.dot(x_ref[...], w_ref[...], preferred_element_type=jnp.float32)
    y = y + b_ref[...]
    if act == "relu":
        y = jnp.maximum(y, 0.0)
    o_ref[...] = y.astype(o_ref.dtype)


def _matmul_bias_act(x2d, w2d, b2d, act, tm_cap=1024):
    """(M,K)@(K,D)+b with fused activation, tiled over M with a parallel grid."""
    M, K = x2d.shape
    D = w2d.shape[1]
    tm = _largest_divisor_tile(M, tm_cap)
    return pl.pallas_call(
        functools.partial(_matmul_bias_act_kernel, act=act),
        out_shape=jax.ShapeDtypeStruct((M, D), jnp.float32),
        grid=(M // tm,),
        in_specs=[
            pl.BlockSpec((tm, K), lambda i: (i, 0)),
            pl.BlockSpec((K, D), lambda i: (0, 0)),
            pl.BlockSpec((1, D), lambda i: (0, 0)),
        ],
        out_specs=pl.BlockSpec((tm, D), lambda i: (i, 0)),
        compiler_params=pltpu.CompilerParams(dimension_semantics=("parallel",)),
        cost_estimate=pl.CostEstimate(
            flops=2 * M * K * D, transcendentals=0,
            bytes_accessed=4 * (M * K + K * D + M * D)),
    )(x2d, w2d, b2d)


def _conv3x3_bn_relu_kernel(*args, H, W, cin_list, Cout, rt):
    """Fused (virtual concat) + zero-pad + 3x3 conv (im2col, K=9*Cin) + BN + ReLU.

    args = (*x_part_refs, w_ref, scale_ref, shift_ref, o_ref, pad_ref)
      x_part_ref : (1, H, W, c)      per channel-group (concat is done in VMEM)
      w_ref      : (9*Cin, Cout)     im2col-flattened HWIO weight
      scale/shift: (1, Cout)         folded BatchNorm (+ conv bias)
      o_ref      : (1, H, W, Cout)
      pad_ref    : VMEM scratch (H+2, W+2, Cin), zero border.
    """
    n_parts = len(cin_list)
    x_refs = args[:n_parts]
    w_ref, scale_ref, shift_ref, o_ref, pad_ref = args[n_parts:]
    Cin = sum(cin_list)

    # Zero padded scratch, then write the channel groups (fused concat, no HBM trip).
    pad_ref[...] = jnp.zeros_like(pad_ref)
    off = 0
    for xr, c in zip(x_refs, cin_list):
        pad_ref[1:H + 1, 1:W + 1, off:off + c] = xr[0]
        off += c

    # Row-chunked im2col matmul: one dot with K = 9*Cin per chunk.
    for ci in range(H // rt):
        r0 = ci * rt
        parts = []
        for kh in range(3):
            for kw in range(3):
                parts.append(
                    pad_ref[r0 + kh:r0 + kh + rt, kw:kw + W, :].reshape(rt * W, Cin))
        patch = jnp.concatenate(parts, axis=1)                     # (rt*W, 9*Cin)
        y = jnp.dot(patch, w_ref[...], preferred_element_type=jnp.float32)
        y = y * scale_ref[...] + shift_ref[...]
        y = jnp.maximum(y, 0.0)
        o_ref[0, r0:r0 + rt, :, :] = y.reshape(rt, W, Cout).astype(o_ref.dtype)


def _conv1x1_sigmoid_kernel(x_ref, wt_ref, b_ref, o_ref):
    # x:(1,tm,Cin)  wt:(Cout,Cin)  b:(Cout,1)  -> o:(1,Cout,tm)  (lane-dense over tm)
    y = lax.dot_general(wt_ref[...], x_ref[0],
                        dimension_numbers=(((1,), (1,)), ((), ())),
                        preferred_element_type=jnp.float32)
    y = y + b_ref[...]
    o_ref[0] = jax.nn.sigmoid(y).astype(o_ref.dtype)


# ------------------------------------------------------------------ wrappers --

def upconv2x2_relu(x, w, b):
    """ConvTranspose2d(k=2, s=2) + ReLU as a pixel-shuffle matmul.
    x: (N,H,W,Cin), w: (Cin,2,2,Cout), b: (Cout,)."""
    N, H, W, Cin = x.shape
    Cout = w.shape[-1]
    y = _matmul_bias_act(x.reshape(N * H * W, Cin),
                         w.reshape(Cin, 4 * Cout),
                         jnp.tile(b, 4).reshape(1, 4 * Cout), act="relu")
    y = y.reshape(N, H, W, 2, 2, Cout)
    y = jnp.transpose(y, (0, 1, 3, 2, 4, 5)).reshape(N, 2 * H, 2 * W, Cout)
    return y


def conv3x3_bn_relu(x_parts, w_hwio, scale, shift):
    """3x3 'same' conv over the (virtual) channel-concat of x_parts, + BN + ReLU."""
    N, H, W, _ = x_parts[0].shape
    cin_list = tuple(int(p.shape[-1]) for p in x_parts)
    Cin = sum(cin_list)
    Cout = w_hwio.shape[-1]
    assert w_hwio.shape == (3, 3, Cin, Cout)
    w9 = w_hwio.reshape(9 * Cin, Cout)
    rt = _largest_divisor_tile(H, max(8, 256 // W))

    in_specs = [pl.BlockSpec((1, H, W, c), lambda n: (n, 0, 0, 0)) for c in cin_list]
    in_specs += [pl.BlockSpec((9 * Cin, Cout), lambda n: (0, 0)),
                 pl.BlockSpec((1, Cout), lambda n: (0, 0)),
                 pl.BlockSpec((1, Cout), lambda n: (0, 0))]

    kern = functools.partial(_conv3x3_bn_relu_kernel, H=H, W=W,
                             cin_list=cin_list, Cout=Cout, rt=rt)
    return pl.pallas_call(
        kern,
        out_shape=jax.ShapeDtypeStruct((N, H, W, Cout), jnp.float32),
        grid=(N,),
        in_specs=in_specs,
        out_specs=pl.BlockSpec((1, H, W, Cout), lambda n: (n, 0, 0, 0)),
        scratch_shapes=[pltpu.VMEM((H + 2, W + 2, Cin), jnp.float32)],
        compiler_params=pltpu.CompilerParams(dimension_semantics=("parallel",)),
        cost_estimate=pl.CostEstimate(
            flops=2 * N * H * W * 9 * Cin * Cout, transcendentals=0,
            bytes_accessed=4 * (N * H * W * (Cin + Cout) + 9 * Cin * Cout)),
    )(*x_parts, w9, scale.reshape(1, Cout), shift.reshape(1, Cout))


def conv1x1_sigmoid_nchw(x_nhwc, w, b):
    """1x1 conv + sigmoid, emitting NCHW directly (lane-dense over H*W)."""
    N, H, W, Cin = x_nhwc.shape
    Cout = w.shape[1]
    HW = H * W
    tm = _largest_divisor_tile(HW, 1024)
    x3 = x_nhwc.reshape(N, HW, Cin)
    out = pl.pallas_call(
        _conv1x1_sigmoid_kernel,
        out_shape=jax.ShapeDtypeStruct((N, Cout, HW), jnp.float32),
        grid=(N, HW // tm),
        in_specs=[
            pl.BlockSpec((1, tm, Cin), lambda n, i: (n, i, 0)),
            pl.BlockSpec((Cout, Cin), lambda n, i: (0, 0)),
            pl.BlockSpec((Cout, 1), lambda n, i: (0, 0)),
        ],
        out_specs=pl.BlockSpec((1, Cout, tm), lambda n, i: (n, 0, i)),
        compiler_params=pltpu.CompilerParams(
            dimension_semantics=("parallel", "parallel")),
        cost_estimate=pl.CostEstimate(
            flops=2 * N * HW * Cin * Cout, transcendentals=N * HW * Cout,
            bytes_accessed=4 * (N * HW * (Cin + Cout) + Cin * Cout)),
    )(x3, jnp.transpose(w), b.reshape(Cout, 1))
    return out.reshape(N, Cout, H, W)


def _fold_bn(conv_b, bn):
    scale = bn["gamma"] / jnp.sqrt(bn["var"] + BN_EPS)
    shift = bn["beta"] + (conv_b - bn["mean"]) * scale
    return scale, shift


def decoder_forward(params, inputs_nchw, activations_nchw):
    """Matches Decoder.forward (eval mode). Inputs NCHW; returns NCHW."""
    x = jnp.transpose(inputs_nchw, (0, 2, 3, 1))                 # -> NHWC
    for blk, a in zip(params["blocks"], activations_nchw):
        x = upconv2x2_relu(x, blk["up_w"], blk["up_b"])
        if a is not None:
            a_nhwc = jnp.transpose(a, (0, 2, 3, 1))
            s1, sh1 = _fold_bn(blk["c1_b"], blk["bn1"])
            x = conv3x3_bn_relu([a_nhwc, x], blk["c1_w"], s1, sh1)   # fused concat
        s2, sh2 = _fold_bn(blk["c2_b"], blk["bn2"])
        x = conv3x3_bn_relu([x], blk["c2_w"], s2, sh2)
    # nn.Dropout2d(p=0.2) is identity in inference mode.
    return conv1x1_sigmoid_nchw(x, params["out_w"], params["out_b"])  # NCHW


# ------------------------------------------------------- params & reference --

def init_params(key, d_in, filters, num_classes):
    blocks = []
    c_in = d_in
    for f_ in filters:
        keys = jax.random.split(key, 16)
        key = keys[0]
        nrm = lambda k, s: 0.1 * jax.random.normal(k, s, jnp.float32)
        blk = {
            "up_w": nrm(keys[1], (c_in, 2, 2, f_)),       # ConvTranspose2d (Cin,kh,kw,Cout)
            "up_b": nrm(keys[2], (f_,)),
            "c1_w": nrm(keys[3], (3, 3, 2 * f_, f_)),     # Conv2d 3x3, HWIO
            "c1_b": nrm(keys[4], (f_,)),
            "bn1": {
                "gamma": 1.0 + nrm(keys[5], (f_,)),
                "beta": nrm(keys[6], (f_,)),
                "mean": nrm(keys[7], (f_,)),
                "var": 0.9 + 0.1 * jax.random.uniform(keys[8], (f_,), jnp.float32),
            },
            "c2_w": nrm(keys[9], (3, 3, f_, f_)),
            "c2_b": nrm(keys[10], (f_,)),
            "bn2": {
                "gamma": 1.0 + nrm(keys[11], (f_,)),
                "beta": nrm(keys[12], (f_,)),
                "mean": nrm(keys[13], (f_,)),
                "var": 0.9 + 0.1 * jax.random.uniform(keys[14], (f_,), jnp.float32),
            },
        }
        blocks.append(blk)
        c_in = f_
    k1, k2 = jax.random.split(key)
    return {
        "blocks": blocks,
        "out_w": 0.1 * jax.random.normal(k1, (c_in, num_classes), jnp.float32),
        "out_b": 0.1 * jax.random.normal(k2, (num_classes,), jnp.float32),
    }


def _ref_bn(x, bn, conv_b):
    return (x + conv_b - bn["mean"]) / jnp.sqrt(bn["var"] + BN_EPS) * bn["gamma"] + bn["beta"]


def ref_decoder_forward(params, inputs_nchw, activations_nchw):
    """Pure-JAX (XLA conv) reference, eval-mode semantics."""
    x = jnp.transpose(inputs_nchw, (0, 2, 3, 1))
    for blk, a in zip(params["blocks"], activations_nchw):
        N, H, W, _ = x.shape
        Cout = blk["up_w"].shape[-1]
        y = jnp.einsum("nhwi,iklo->nhwklo", x, blk["up_w"]) + blk["up_b"]
        y = jnp.transpose(y, (0, 1, 3, 2, 4, 5)).reshape(N, 2 * H, 2 * W, Cout)
        x = jnp.maximum(y, 0.0)
        if a is not None:
            a_nhwc = jnp.transpose(a, (0, 2, 3, 1))
            x = jnp.concatenate([a_nhwc, x], axis=-1)
            x = lax.conv_general_dilated(x, blk["c1_w"], (1, 1), "SAME",
                                         dimension_numbers=("NHWC", "HWIO", "NHWC"))
            x = jnp.maximum(_ref_bn(x, blk["bn1"], blk["c1_b"]), 0.0)
        x = lax.conv_general_dilated(x, blk["c2_w"], (1, 1), "SAME",
                                     dimension_numbers=("NHWC", "HWIO", "NHWC"))
        x = jnp.maximum(_ref_bn(x, blk["bn2"], blk["c2_b"]), 0.0)
    out = jnp.einsum("nhwc,co->nhwo", x, params["out_w"]) + params["out_b"]
    out = jax.nn.sigmoid(out)
    return jnp.transpose(out, (0, 3, 1, 2))


# ---------------------------------------------------------------------- main --

if __name__ == "__main__":
    d_in, filters, num_classes = 16, [8, 4], 3
    N, H, W = 2, 4, 4

    key = jax.random.PRNGKey(0)
    k_in, k_a0, k_a1, k_p = jax.random.split(key, 4)
    inputs = jax.random.normal(k_in, (N, d_in, H, W), jnp.float32)        # NCHW
    activations = [
        jax.random.normal(k_a0, (N, filters[0], 2 * H, 2 * W), jnp.float32),
        jax.random.normal(k_a1, (N, filters[1], 4 * H, 4 * W), jnp.float32),
    ]
    params = init_params(k_p, d_in, filters, num_classes)

    out = jax.block_until_ready(decoder_forward(params, inputs, activations))
    ref = jax.block_until_ready(ref_decoder_forward(params, inputs, activations))

    assert out.shape == (N, num_classes, 4 * H, 4 * W), out.shape
    np.testing.assert_allclose(np.asarray(out), np.asarray(ref), rtol=1e-4, atol=1e-5)
    print("KERNEL_OK")
</pallas_src>

<mosaic_0001>
module attributes {stable_mosaic.version = 11 : i64} {
  func.func @_matmul_bias_act_kernel(%arg0: i32, %arg1: memref<32x16xf32, #tpu.memory_space<vmem>>, %arg2: memref<16x32xf32, #tpu.memory_space<vmem>>, %arg3: memref<1x32xf32, #tpu.memory_space<vmem>>, %arg4: memref<32x32xf32, #tpu.memory_space<vmem>>) attributes {dimension_semantics = [#tpu.dimension_semantics<parallel>], iteration_bounds = array<i64: 1>, scalar_prefetch = 0 : i64, scratch_operands = 0 : i64, tpu.core_type = #tpu.core_type<tc>, window_params = [{transform_indices = @transform_0, window_bounds = array<i64: 32, 16>}, {pipeline_mode = #tpu.pipeline_mode<synchronous>, transform_indices = @transform_1, window_bounds = array<i64: 16, 32>}, {pipeline_mode = #tpu.pipeline_mode<synchronous>, transform_indices = @transform_2, window_bounds = array<i64: 1, 32>}, {transform_indices = @transform_3, window_bounds = array<i64: 32, 32>}]} {
    %c0 = arith.constant 0 : index
    %c0_0 = arith.constant 0 : index
    %0 = vector.load %arg1[%c0, %c0_0] : memref<32x16xf32, #tpu.memory_space<vmem>>, vector<32x16xf32>
    %c0_1 = arith.constant 0 : index
    %c0_2 = arith.constant 0 : index
    %1 = vector.load %arg2[%c0_1, %c0_2] : memref<16x32xf32, #tpu.memory_space<vmem>>, vector<16x32xf32>
    %cst = arith.constant dense<0.000000e+00> : vector<32x32xf32>
    %2 = tpu.matmul %0, %1, %cst {dimension_numbers = #tpu.dot_dimension_numbers<[1], [0], [0], [1], [0, 0, 1, 1], [], []>} : vector<32x16xf32>, vector<16x32xf32>, vector<32x32xf32> -> vector<32x32xf32>
    %c0_3 = arith.constant 0 : index
    %c0_4 = arith.constant 0 : index
    %3 = vector.load %arg3[%c0_3, %c0_4] : memref<1x32xf32, #tpu.memory_space<vmem>>, vector<1x32xf32>
    %4 = vector.broadcast %3 : vector<1x32xf32> to vector<32x32xf32>
    %5 = arith.addf %2, %4 : vector<32x32xf32>
    %cst_5 = arith.constant 0.000000e+00 : f32
    %6 = vector.broadcast %cst_5 : f32 to vector<32x32xf32>
    %7 = arith.maximumf %5, %6 : vector<32x32xf32>
    %c0_6 = arith.constant 0 : index
    %c0_7 = arith.constant 0 : index
    %8 = vector.load %arg4[%c0_6, %c0_7] : memref<32x32xf32, #tpu.memory_space<vmem>>, vector<32x32xf32>
    tpu.vector_store %arg4[%c0_6, %c0_7], %7 {strides = array<i32>} : memref<32x32xf32, #tpu.memory_space<vmem>>, vector<32x32xf32>,
    return
  }
  func.func @transform_0(%arg0: i32) -> (i32, i32) {
    %c0_i32 = arith.constant 0 : i32
    %c0_i32_0 = arith.constant 0 : i32
    return %arg0, %c0_i32 : i32, i32
  }
  func.func @transform_1(%arg0: i32) -> (i32, i32) {
    %c0_i32 = arith.constant 0 : i32
    %c0_i32_0 = arith.constant 0 : i32
    %c0_i32_1 = arith.constant 0 : i32
    return %c0_i32, %c0_i32_0 : i32, i32
  }
  func.func @transform_2(%arg0: i32) -> (i32, i32) {
    %c0_i32 = arith.constant 0 : i32
    %c0_i32_0 = arith.constant 0 : i32
    %c0_i32_1 = arith.constant 0 : i32
    return %c0_i32, %c0_i32_0 : i32, i32
  }
  func.func @transform_3(%arg0: i32) -> (i32, i32) {
    %c0_i32 = arith.constant 0 : i32
    %c0_i32_0 = arith.constant 0 : i32
    return %arg0, %c0_i32 : i32, i32
  }
}

</mosaic_0001>

<bundles_post_ra>
// kernel: tpu_custom_call.1
= control target key start
LH: loop header
LB: loop body
LE: loop exit
PB: predicated region body
PF: predicated region fallthrough
CT: control target
= control target key end

     0   :  { %vm28_vm0 = vcmask 130048   ;;  %s261_s0 = inlined_call_operand.vmem [shape: f32[32,16], index: 0, kind: input, shape index: {}]   ;;  %s262_s1 = inlined_call_operand.vmem [shape: f32[16,32], index: 1, kind: input, shape index: {}]   ;;  %s263_s2 = inlined_call_operand.vmem [shape: f32[1,32], index: 2, kind: input, shape index: {}]   ;;  %s264_s3 = inlined_call_operand.hbm [shape: f32[32,32], index: 3, kind: output, shape index: {}]  }
   0x1   :  { %v19_v0 = vld [vmem:[%s262_s1] sm:$0xff]  ;;  %v20_v1 = vld [vmem:[%s262_s1 + $0x8] sm:$0xff]  ;;  %v17_v4 = vld [vmem:[%s261_s0 + $0x10] sm:$0xff] }
   0x2   :  { %v15_v2 = vld [vmem:[%s261_s0] sm:$0xff]  ;;  %v172_v3 = vpack.c.bf16 %v20_v1, %v19_v0  ;;  %169 = vmatprep.mubr.msk.f32.mxu1 %vm28_vm0, %v17_v4 }
   0x3   :  { %166 = vmatprep.mubr.msk.f32.mxu0 %vm28_vm0, %v15_v2 }
   0x4   :  { %8 = vsyncpa [#allocation3], 0  ;;  %173 = vmatprep.subr.bf16.mxu0 %v172_v3  ;;  %176 = vmatprep.subr.bf16.mxu1 %v172_v3  ;;  %v16_v5 = vld [vmem:[%s261_s0 + $0x8] sm:$0xff]  ;;  %v18_v6 = vld [vmem:[%s261_s0 + $0x18] sm:$0xff]  ;;  %s205_s25 = smov [#allocation2]   ;;  %vm130_vm1 = vcmask 261120  }
   0x5   :  { %175 = vmatpush3.bf16.msra.mxu0 %v172_v3  ;;  %177 = vmatpush3.bf16.msra.mxu1 %v172_v3  ;;  %v151_v7 = vld [vmem:[%s263_s2] ss:$0 sm:$0xff]  ;;  %s140_s26 = sshll.u32 %s205_s25, 4  ;;  %s141_s26 = int_to_ptr.vmem [resolvable:$true] %s140_s26 }
   0x6   :  { %s181_s0 = scalar_lea.vmem %s141_s26, 512  ;;  %p186_p1 = scmp.lt.s32.totalorder %s141_s26, %s141_s26 }
   0x7   :  { %p182_p0 = scmp.ne.s32.totalorder %s141_s26, %s181_s0  ;;  %p187_p2 = scmp.lt.s32.totalorder %s181_s0, %s181_s0 }
   0x8   :  { %167 = vmatmul.mubr.msk.f32.vlgmr.msra.gmra.mrb[0].mxu0 %vm28_vm0, %v16_v5  ;;  %170 = vmatmul.mubr.msk.f32.vlgmr.msra.gmra.mrb[0].mxu1 %vm28_vm0, %v18_v6 }
   0x9   :  { %p188_p3 = por %p187_p2, %p186_p1 }
   0xb   :  { %p189_p4 = pnand %p188_p3, %p182_p0 }
  0xdb   :  { %v168_v8 = vpop.f32.mrb[0].mxu0  ;;  %v171_v9 = vpop.f32.mrb[0].mxu1 }
  0xdc   :  { %v113_v10 = vadd.f32 %v168_v8, %v151_v7  ;;  %v123_v11 = vadd.f32 %v171_v9, %v151_v7  ;;  %v107_v12 = vpop.f32.mrb[1].mxu0  ;;  %v117_v13 = vpop.f32.mrb[1].mxu1 }
  0xdd   :  { %v108_v14 = vadd.f32 %v151_v7, %v107_v12  ;;  %v118_v15 = vadd.f32 %v151_v7, %v117_v13 }
  0xde   :  { %v127_v16 = vmax.f32 %v113_v10, 0.0  ;;  %v129_v17 = vmax.f32 %v123_v11, 0.0 }
  0xdf   :  { %v126_v18 = vmax.f32 %v108_v14, 0.0  ;;  %v128_v19 = vmax.f32 %v118_v15, 0.0 }
  0xe0   :  { %132 = vst.msk [vmem:[#allocation2 + $0x8] sm:$0xff] %vm130_vm1, %v127_v16  ;;  %134 = vst.msk [vmem:[#allocation2 + $0x18] sm:$0xff] %vm130_vm1, %v129_v17 }
  0xe1   :  { %131 = vst.msk [vmem:[#allocation2] sm:$0xff] %vm130_vm1, %v126_v18  ;;  %133 = vst.msk [vmem:[#allocation2 + $0x10] sm:$0xff] %vm130_vm1, %v128_v19 }
  0xe2   :  { %192 = shalt.err (!%p189_p4)
}
  0xe3   :  { %s193_s28 = scalar_lea.hbm %s264_s3, 512 }
  0xe4   :  { %p194_p5 = scmp.ne.s32.totalorder %s264_s3, %s193_s28  ;;  %p197_p6 = scmp.lt.u32.totalorder %s193_s28, %s264_s3 }
  0xe6   :  { %p199_p7 = pnand %p197_p6, %p194_p5 }
  0xe8   :  { %202 = shalt.err (!%p199_p7)
}
  0xe9   :  { %s206_s6 = smov 128   ;;  %s207_s7 = smov 8  }
  0xea   :  { %146 = dma.vmem_to_hbm [thread:$0]  %s141_s26, 512, %s264_s3, [#allocation3], %s206_s6, %s206_s6, %s207_s7  }
  0xeb   :  { %203 = dma.done.wait [#allocation3], 512  }
  0xec   :  { %204 = vsyncadd [#allocation3], 4294966784 }
  0xed   :  { %150 = vsyncpa [#allocation3], 1 }

</bundles_post_ra>
